<compile_context>
chip_gen: v6e
topology: v6e:2x2x1
jax: 0.10.0
libtpu: 0.0.40
codegen_flags: <defaults>
</compile_context>

<pallas_src>
import math

import numpy as np
import jax
import jax.numpy as jnp
from jax.experimental import pallas as pl
from jax.experimental.pallas import tpu as pltpu

NPERSEG = 512
NOVERLAP = 341
NFFT = 512
STEP = NPERSEG - NOVERLAP          # 171
NBINS = NFFT // 2 + 1              # 257


def _round_up(x, m):
    return ((x + m - 1) // m) * m


def _dba_kernel(seg_ref, w_ref, out_ref):
    """One (TM, 512) chunk of (flattened) segment rows -> per-row weighted band power."""
    # Single fused bf16 MXU matmul against the [cos | sin] DFT basis with window,
    # Welch normalization, A-weighting band weights and 1/n_seg folded in host-side.
    proj = jnp.dot(seg_ref[...], w_ref[...],
                   preferred_element_type=jnp.float32)          # (TM, NCOLS) f32
    p2 = proj * proj

    # Lane reduction: fold the 128-lane column groups with plain VALU adds first,
    # then a single intra-vreg lane reduce.  Zero-padded columns contribute 0.
    ncols = p2.shape[-1]
    s = p2[:, :128]
    for g in range(1, ncols // 128):
        s = s + p2[:, g * 128:(g + 1) * 128]

    # (TM, 1) per-row weighted band power.  Narrow (1-lane) store is masked but
    # tiny relative to the matmul/DMA per step; a lane-dense relayout would cost
    # an equivalent XLU transpose, so we keep it simple.
    out_ref[...] = jnp.sum(s, axis=-1, keepdims=True)


def _build_dft_matrix(fs, nfft, f_up, f_low, n_seg):
    """(NPERSEG, NCOLS) f32 matrix W s.t. sum((seg @ W)**2) == weighted band power."""
    n = np.arange(NPERSEG, dtype=np.float64)
    window = 0.54 - 0.46 * np.cos(2.0 * np.pi * n / NPERSEG)    # hamming, periodic
    win_power = float(np.sum(window ** 2))

    f_res = fs / nfft
    lev_up = math.floor(f_up / f_res + 1)
    lev_low = math.floor(f_low / f_res + 1)
    k_lo = max(lev_low - 1, 1)          # bin 0: A = -inf -> contributes exactly 0
    k_hi = min(lev_up, NBINS)           # exclusive
    assert k_hi > k_lo, "empty A-weighting band"
    ks = np.arange(k_lo, k_hi)

    freqs = np.fft.fftfreq(NFFT, 1.0 / fs)[:NBINS][ks].astype(np.float64)
    f1, f2c, f3, f4 = 20.6, 107.7, 737.9, 12194.0
    fsq = freqs ** 2
    num = (f4 ** 2) * fsq ** 2
    den = (fsq + f1 ** 2) * np.sqrt(fsq + f2c ** 2) * np.sqrt(fsq + f3 ** 2) * (fsq + f4 ** 2)
    A = 20.0 * np.log10(num / den) + 2.0                        # -A1000, A1000 = -2
    w_a = 10.0 ** (A / 10.0)

    # Welch one-sided doubling (interior bins), normalization, segment mean.
    factor = np.where((ks > 0) & (ks < NBINS - 1), 2.0, 1.0)
    col_scale = np.sqrt(factor * w_a / (win_power * fs * n_seg))

    ang = 2.0 * np.pi * np.outer(n, ks) / NFFT
    cos_w = window[:, None] * np.cos(ang) * col_scale[None, :]
    sin_w = window[:, None] * np.sin(ang) * col_scale[None, :]  # sign irrelevant (|.|^2)

    n_sel = len(ks)
    # Keep the 128-multiple padding (326 -> 384): exact for v5e's 128-wide MXU.
    ncols = max(128, _round_up(2 * n_sel, 128))
    W = np.zeros((NPERSEG, ncols), np.float32)
    W[:, :n_sel] = cos_w
    W[:, n_sel:2 * n_sel] = sin_w
    return W


def dba_loss(x, fs=3125, nfft=512, f_up=1000, f_low=1):
    """Pallas implementation of dBA_Loss(fs, nfft, f_up, f_low)(x) for x of shape (B, N)."""
    x = jnp.asarray(x, jnp.float32)
    B, N = x.shape
    n_seg = (N - NPERSEG) // STEP + 1
    assert n_seg >= 1, "signal must be at least nperseg=512 samples long"

    W = _build_dft_matrix(fs, nfft, f_up, f_low, n_seg)
    ncols = W.shape[1]
    W_bf16 = jnp.asarray(W, jnp.bfloat16)                       # 384 KiB, VMEM-resident

    # ---- segment extraction (strided gather in bf16, jnp iota indices) ----
    # TODO(synk): for very long signals, extract segments in-kernel from a
    # contiguous per-chunk window (memory_space=pl.ANY + pltpu.make_async_copy)
    # to avoid the ~3x replicated HBM traffic of this overlapping gather.
    x_bf16 = x.astype(jnp.bfloat16)
    idx = (jnp.arange(n_seg, dtype=jnp.int32)[:, None] * STEP
           + jnp.arange(NPERSEG, dtype=jnp.int32)[None, :])     # traced iota, not a constant
    seg = jnp.take(x_bf16, idx, axis=1)                         # (B, n_seg, 512) bf16

    # ---- flatten batch x segments into one row axis; chunk it for the grid ----
    R = B * n_seg
    seg = seg.reshape(R, NPERSEG)
    # TM up to 2048 rows: bf16 tile = 2 MiB (double-buffered 4 MiB) + 384 KiB W
    # + ~6 MiB f32 intermediates -> well under the 32 MiB scoped VMEM default on
    # v5e/v6e and within v7x's halved 64 MiB physical VMEM.
    TM = min(2048, _round_up(R, 8))
    n_chunks = -(-R // TM)
    R_pad = n_chunks * TM
    if R_pad != R:
        seg = jnp.pad(seg, ((0, R_pad - R), (0, 0)))            # zero rows -> 0 power

    row_power = pl.pallas_call(
        _dba_kernel,
        out_shape=jax.ShapeDtypeStruct((R_pad, 1), jnp.float32),
        grid=(n_chunks,),
        in_specs=[
            # one chunk of flattened segment rows per grid step (pipelined DMA)
            pl.BlockSpec((TM, NPERSEG), lambda c: (c, 0)),
            # folded DFT matrix: constant index map -> stays VMEM-resident
            pl.BlockSpec((NPERSEG, ncols), lambda c: (0, 0)),
        ],
        # each chunk writes its own per-row output block: no cross-step state,
        # so the grid axis is safely "parallel" (v7x megacore sharding).
        out_specs=pl.BlockSpec((TM, 1), lambda c: (c, 0)),
        compiler_params=pltpu.CompilerParams(
            dimension_semantics=("parallel",),
            vmem_limit_bytes=32 * 1024 * 1024),
    )(seg, W_bf16)

    # ---- finish per-batch reduction + dB conversion on a tiny array in JAX ----
    band_power = jnp.sum(row_power[:R, 0].reshape(B, n_seg), axis=-1)  # (B,)
    level = 10.0 * jnp.log10(band_power)                               # level_A per batch
    return jnp.mean(level)


def _ref_dba_loss_numpy(x, fs=3125, nfft=512, f_up=1000, f_low=1):
    """Float64 numpy re-implementation of the PyTorch module for verification."""
    x = np.asarray(x, np.float64)
    B = x.shape[0]
    n = np.arange(NPERSEG)
    window = 0.54 - 0.46 * np.cos(2.0 * np.pi * n / NPERSEG)
    win_power = np.sum(window ** 2)
    total = 0.0
    for b in range(B):
        sig = x[b]
        n_seg = (len(sig) - NPERSEG) // STEP + 1
        segs = np.stack([sig[i * STEP:i * STEP + NPERSEG] for i in range(n_seg)]) * window
        ffts = np.fft.fft(segs, NFFT, axis=-1)
        psd = np.abs(ffts[:, :NBINS]) ** 2
        psd /= win_power * fs
        psd[:, 1:-1] *= 2
        pxx = psd.mean(axis=0)
        freqs = np.fft.fftfreq(NFFT, 1.0 / fs)[:NBINS]
        f1, f2c, f3, f4 = 20.6, 107.7, 737.9, 12194.0
        with np.errstate(divide="ignore"):
            num = f4 ** 2 * freqs ** 4
            den = (freqs ** 2 + f1 ** 2) * np.sqrt(freqs ** 2 + f2c ** 2) * \
                  np.sqrt(freqs ** 2 + f3 ** 2) * (freqs ** 2 + f4 ** 2)
            A = 20.0 * np.log10(num / den) + 2.0
            pxy = 10.0 * np.log10(pxx) + A
        f_res = fs / nfft
        up = math.floor(f_up / f_res + 1)
        lo = math.floor(f_low / f_res + 1)
        with np.errstate(divide="ignore"):
            lvl = 10.0 * np.log10(np.sum(10.0 ** (pxy[lo - 1:up] / 10.0)))
        total += lvl
    return total / B


if __name__ == "__main__":
    B, N = 2, NPERSEG + 3 * STEP   # (2, 1025) -> 4 Welch segments per batch element
    key = jax.random.PRNGKey(0)
    x = jax.random.normal(key, (B, N), dtype=jnp.float32)

    loss = dba_loss(x, fs=3125, nfft=512, f_up=1000, f_low=1)
    loss = jax.block_until_ready(loss)

    ref = _ref_dba_loss_numpy(np.asarray(x), fs=3125, nfft=512, f_up=1000, f_low=1)
    assert np.isfinite(float(loss)), "kernel produced non-finite loss"
    assert abs(float(loss) - ref) <= 1e-2 * max(1.0, abs(ref)), (float(loss), ref)

    print("KERNEL_OK")
</pallas_src>

<mosaic_0001>
module attributes {stable_mosaic.version = 11 : i64} {
  func.func @_dba_kernel(%arg0: i32, %arg1: memref<8x512xbf16, #tpu.memory_space<vmem>>, %arg2: memref<512x384xbf16, #tpu.memory_space<vmem>>, %arg3: memref<8x1xf32, #tpu.memory_space<vmem>>) attributes {dimension_semantics = [#tpu.dimension_semantics<parallel>], iteration_bounds = array<i64: 1>, scalar_prefetch = 0 : i64, scratch_operands = 0 : i64, tpu.core_type = #tpu.core_type<tc>, window_params = [{transform_indices = @transform_0, window_bounds = array<i64: 8, 512>}, {pipeline_mode = #tpu.pipeline_mode<synchronous>, transform_indices = @transform_1, window_bounds = array<i64: 512, 384>}, {transform_indices = @transform_2, window_bounds = array<i64: 8, 1>}]} {
    %c0 = arith.constant 0 : index
    %c0_0 = arith.constant 0 : index
    %0 = vector.load %arg1[%c0, %c0_0] : memref<8x512xbf16, #tpu.memory_space<vmem>>, vector<8x512xbf16>
    %c0_1 = arith.constant 0 : index
    %c0_2 = arith.constant 0 : index
    %1 = vector.load %arg2[%c0_1, %c0_2] : memref<512x384xbf16, #tpu.memory_space<vmem>>, vector<512x384xbf16>
    %cst = arith.constant dense<0.000000e+00> : vector<8x384xf32>
    %2 = tpu.matmul %0, %1, %cst {dimension_numbers = #tpu.dot_dimension_numbers<[1], [0], [0], [1], [0, 0, 1, 1], [], []>} : vector<8x512xbf16>, vector<512x384xbf16>, vector<8x384xf32> -> vector<8x384xf32>
    %3 = arith.mulf %2, %2 : vector<8x384xf32>
    %4 = vector.extract_strided_slice %3 {offsets = [0, 0], sizes = [8, 128], strides = [1, 1]} : vector<8x384xf32> to vector<8x128xf32>
    %5 = vector.extract_strided_slice %3 {offsets = [0, 128], sizes = [8, 128], strides = [1, 1]} : vector<8x384xf32> to vector<8x128xf32>
    %6 = arith.addf %4, %5 : vector<8x128xf32>
    %7 = vector.extract_strided_slice %3 {offsets = [0, 256], sizes = [8, 128], strides = [1, 1]} : vector<8x384xf32> to vector<8x128xf32>
    %8 = arith.addf %6, %7 : vector<8x128xf32>
    %cst_3 = arith.constant dense<0.000000e+00> : vector<8xf32>
    %9 = vector.multi_reduction <add>, %8, %cst_3 [1] : vector<8x128xf32> to vector<8xf32>
    %10 = vector.shape_cast %9 : vector<8xf32> to vector<8x1xf32>
    %c0_4 = arith.constant 0 : index
    %c0_5 = arith.constant 0 : index
    %11 = vector.load %arg3[%c0_4, %c0_5] : memref<8x1xf32, #tpu.memory_space<vmem>>, vector<8x1xf32>
    tpu.vector_store %arg3[%c0_4, %c0_5], %10 {strides = array<i32>} : memref<8x1xf32, #tpu.memory_space<vmem>>, vector<8x1xf32>,
    return
  }
  func.func @transform_0(%arg0: i32) -> (i32, i32) {
    %c0_i32 = arith.constant 0 : i32
    %c0_i32_0 = arith.constant 0 : i32
    return %arg0, %c0_i32 : i32, i32
  }
  func.func @transform_1(%arg0: i32) -> (i32, i32) {
    %c0_i32 = arith.constant 0 : i32
    %c0_i32_0 = arith.constant 0 : i32
    %c0_i32_1 = arith.constant 0 : i32
    return %c0_i32, %c0_i32_0 : i32, i32
  }
  func.func @transform_2(%arg0: i32) -> (i32, i32) {
    %c0_i32 = arith.constant 0 : i32
    %c0_i32_0 = arith.constant 0 : i32
    return %arg0, %c0_i32 : i32, i32
  }
}

</mosaic_0001>

<bundles_post_ra>
// kernel: tpu_custom_call.1
= control target key start
LH: loop header
LB: loop body
LE: loop exit
PB: predicated region body
PF: predicated region fallthrough
CT: control target
= control target key end

     0   :  { %7 = vsyncpa [#allocation3], 0  ;;  %s1235_s0 = inlined_call_operand.hbm [shape: bf16[8,512], index: 0, kind: input, shape index: {}]   ;;  %s1236_s1 = inlined_call_operand.hbm [shape: bf16[512,384], index: 1, kind: input, shape index: {}]   ;;  %s1237_s2 = inlined_call_operand.vmem [shape: f32[8,1], index: 2, kind: output, shape index: {}]  }
   0x1   :  { %8 = vsyncpa [#allocation5], 0  ;;  %s1195_s9 = smov [#allocation2]   ;;  %s1196_s11 = smov [#allocation4]  }
   0x2   :  { %s15_s10 = sshll.u32 %s1195_s9, 4  ;;  %s24_s12 = sshll.u32 %s1196_s11, 4  ;;  %s16_s10 = int_to_ptr.vmem [resolvable:$true] %s15_s10  ;;  %s25_s12 = int_to_ptr.vmem [resolvable:$true] %s24_s12 }
   0x3   :  { %s1159_s13 = scalar_lea.vmem %s16_s10, 256  ;;  %p1164_p1 = scmp.lt.s32.totalorder %s16_s10, %s16_s10 }
   0x4   :  { %p1160_p0 = scmp.ne.s32.totalorder %s16_s10, %s1159_s13  ;;  %p1165_p2 = scmp.lt.s32.totalorder %s1159_s13, %s1159_s13 }
   0x6   :  { %p1166_p3 = por %p1165_p2, %p1164_p1 }
   0x8   :  { %p1167_p4 = pnand %p1166_p3, %p1160_p0 }
   0xa   :  { %1170 = shalt.err (!%p1167_p4)
}
   0xb   :  { %18 = dma.hbm_to_vmem [thread:$0]  %s1235_s0, 256, %s16_s10, [#allocation3]  }
   0xc   :  { %s1179_s16 = scalar_lea.vmem %s25_s12, 12288  ;;  %p1184_p6 = scmp.lt.s32.totalorder %s25_s12, %s25_s12 }
   0xd   :  { %p1180_p5 = scmp.ne.s32.totalorder %s25_s12, %s1179_s16  ;;  %p1185_p7 = scmp.lt.s32.totalorder %s1179_s16, %s1179_s16 }
   0xf   :  { %p1186_p8 = por %p1185_p7, %p1184_p6 }
  0x11   :  { %p1187_p9 = pnand %p1186_p8, %p1180_p5 }
  0x13   :  { %1190 = shalt.err (!%p1187_p9)
}
  0x14   :  { %s1197_s17 = smov 192   ;;  %s1198_s18 = smov 12  }
  0x15   :  { %30 = dma.hbm_to_vmem [thread:$0]  %s1236_s1, 12288, %s25_s12, [#allocation5], %s1197_s17, %s1197_s17, %s1198_s18  }
  0x16   :  { %1191 = dma.done.wait [#allocation3], 256  }
  0x17   :  { %1192 = vsyncadd [#allocation3], 4294967040 }
  0x18   :  { %1193 = dma.done.wait [#allocation5], 12288  }
  0x19   :  { %1194 = vsyncadd [#allocation5], 4294955008  ;;  %v1019_v0 = vld [vmem:[#allocation4 + $0xac] ss:$12 sps:$4 sm:$0xff]   ;;  %v1023_v2 = vld [vmem:[#allocation4 + $0xa8] ss:$12 sps:$4 sm:$0xff]  }
  0x1a   :  { %v1021_v1 = vld [vmem:[#allocation4 + $0x22c] ss:$12 sps:$4 sm:$0xff]   ;;  %694 = vmatprep.subr.bf16.mxu0 %v1019_v0  ;;  %v1024_v3 = vld [vmem:[#allocation4 + $0x228] ss:$12 sps:$4 sm:$0xff]   ;;  %v1029_v6 = vld [vmem:[#allocation4 + $0x90] ss:$12 sps:$4 sm:$0xff]  }
  0x1b   :  { %735 = vmatprep.subr.bf16.mxu1 %v1021_v1  ;;  %v1025_v4 = vld [vmem:[#allocation4 + $0x94] ss:$12 sps:$4 sm:$0xff]   ;;  %695 = vmatpush1.bf16.msra.mxu0 %v1023_v2  ;;  %v1030_v7 = vld [vmem:[#allocation4 + $0x210] ss:$12 sps:$4 sm:$0xff]   ;;  %v1035_v10 = vld [vmem:[#allocation4 + $0x78] ss:$12 sps:$4 sm:$0xff]  }
  0x1c   :  { %736 = vmatpush1.bf16.msra.mxu1 %v1024_v3  ;;  %v1027_v5 = vld [vmem:[#allocation4 + $0x214] ss:$12 sps:$4 sm:$0xff]   ;;  %696 = vmatprep.subr.bf16.mxu0 %v1025_v4  ;;  %v1031_v8 = vld [vmem:[#allocation4 + $0x7c] ss:$12 sps:$4 sm:$0xff]   ;;  %v1036_v11 = vld [vmem:[#allocation4 + $0x1f8] ss:$12 sps:$4 sm:$0xff]  }
  0x1d   :  { %737 = vmatprep.subr.bf16.mxu1 %v1027_v5  ;;  %v1033_v9 = vld [vmem:[#allocation4 + $0x1fc] ss:$12 sps:$4 sm:$0xff]   ;;  %v1037_v12 = vld [vmem:[#allocation4 + $0x64] ss:$12 sps:$4 sm:$0xff]   ;;  %v1041_v14 = vld [vmem:[#allocation4 + $0x60] ss:$12 sps:$4 sm:$0xff]  }
  0x1e   :  { %v1039_v13 = vld [vmem:[#allocation4 + $0x1e4] ss:$12 sps:$4 sm:$0xff]   ;;  %v1042_v15 = vld [vmem:[#allocation4 + $0x1e0] ss:$12 sps:$4 sm:$0xff]   ;;  %v1047_v18 = vld [vmem:[#allocation4 + $0x48] ss:$12 sps:$4 sm:$0xff]  }
  0x1f   :  { %697 = vmatpush1.bf16.msra.mxu0 %v1029_v6  ;;  %v1043_v16 = vld [vmem:[#allocation4 + $0x4c] ss:$12 sps:$4 sm:$0xff]   ;;  %v1048_v19 = vld [vmem:[#allocation4 + $0x1c8] ss:$12 sps:$4 sm:$0xff]   ;;  %v1053_v22 = vld [vmem:[#allocation4 + $0x30] ss:$12 sps:$4 sm:$0xff]  }
  0x20   :  { %738 = vmatpush1.bf16.msra.mxu1 %v1030_v7  ;;  %698 = vmatprep.subr.bf16.mxu0 %v1031_v8  ;;  %v1045_v17 = vld [vmem:[#allocation4 + $0x1cc] ss:$12 sps:$4 sm:$0xff]   ;;  %v1049_v20 = vld [vmem:[#allocation4 + $0x34] ss:$12 sps:$4 sm:$0xff]   ;;  %v1054_v23 = vld [vmem:[#allocation4 + $0x1b0] ss:$12 sps:$4 sm:$0xff]  }
  0x21   :  { %739 = vmatprep.subr.bf16.mxu1 %v1033_v9  ;;  %v1051_v21 = vld [vmem:[#allocation4 + $0x1b4] ss:$12 sps:$4 sm:$0xff]   ;;  %v1055_v24 = vld [vmem:[#allocation4 + $0x1c] ss:$12 sps:$4 sm:$0xff]   ;;  %v1059_v26 = vld [vmem:[#allocation4 + $0x18] ss:$12 sps:$4 sm:$0xff]  }
  0x22   :  { %v1057_v25 = vld [vmem:[#allocation4 + $0x19c] ss:$12 sps:$4 sm:$0xff]   ;;  %v1060_v27 = vld [vmem:[#allocation4 + $0x198] ss:$12 sps:$4 sm:$0xff]   ;;  %v1065_v30 = vld [vmem:[#allocation4] ss:$12 sps:$4 sm:$0xff]  }
  0x23   :  { %699 = vmatpush1.bf16.msra.mxu0 %v1035_v10  ;;  %v1061_v28 = vld [vmem:[#allocation4 + $0x4] ss:$12 sps:$4 sm:$0xff]   ;;  %v1066_v31 = vld [vmem:[#allocation4 + $0x180] ss:$12 sps:$4 sm:$0xff]   ;;  %v1071_v34 = vld [vmem:[#allocation4 + $0x168] ss:$12 sps:$4 sm:$0xff]  }
  0x24   :  { %740 = vmatpush1.bf16.msra.mxu1 %v1036_v11  ;;  %700 = vmatprep.subr.bf16.mxu0 %v1037_v12  ;;  %v1063_v29 = vld [vmem:[#allocation4 + $0x184] ss:$12 sps:$4 sm:$0xff]   ;;  %v1067_v32 = vld [vmem:[#allocation4 + $0x16c] ss:$12 sps:$4 sm:$0xff]   ;;  %v1072_v35 = vld [vmem:[#allocation4 + $0x2e8] ss:$12 sps:$4 sm:$0xff]  }
  0x25   :  { %741 = vmatprep.subr.bf16.mxu1 %v1039_v13  ;;  %v1069_v33 = vld [vmem:[#allocation4 + $0x2ec] ss:$12 sps:$4 sm:$0xff]   ;;  %v1073_v36 = vld [vmem:[#allocation4 + $0x154] ss:$12 sps:$4 sm:$0xff]   ;;  %v1077_v38 = vld [vmem:[#allocation4 + $0x150] ss:$12 sps:$4 sm:$0xff]  }
  0x26   :  { %v1075_v37 = vld [vmem:[#allocation4 + $0x2d4] ss:$12 sps:$4 sm:$0xff]   ;;  %v1078_v39 = vld [vmem:[#allocation4 + $0x2d0] ss:$12 sps:$4 sm:$0xff]   ;;  %v1083_v42 = vld [vmem:[#allocation4 + $0x138] ss:$12 sps:$4 sm:$0xff]  }
  0x27   :  { %701 = vmatpush1.bf16.msra.mxu0 %v1041_v14  ;;  %v1079_v40 = vld [vmem:[#allocation4 + $0x13c] ss:$12 sps:$4 sm:$0xff]   ;;  %v1084_v43 = vld [vmem:[#allocation4 + $0x2b8] ss:$12 sps:$4 sm:$0xff]   ;;  %v1089_v46 = vld [vmem:[#allocation4 + $0x120] ss:$12 sps:$4 sm:$0xff]  }
  0x28   :  { %742 = vmatpush1.bf16.msra.mxu1 %v1042_v15  ;;  %702 = vmatprep.subr.bf16.mxu0 %v1043_v16  ;;  %v1081_v41 = vld [vmem:[#allocation4 + $0x2bc] ss:$12 sps:$4 sm:$0xff]   ;;  %v1085_v44 = vld [vmem:[#allocation4 + $0x124] ss:$12 sps:$4 sm:$0xff]   ;;  %v1090_v47 = vld [vmem:[#allocation4 + $0x2a0] ss:$12 sps:$4 sm:$0xff]  }
  0x29   :  { %743 = vmatprep.subr.bf16.mxu1 %v1045_v17  ;;  %v1087_v45 = vld [vmem:[#allocation4 + $0x2a4] ss:$12 sps:$4 sm:$0xff]   ;;  %v39_v50 = vld [vmem:[#allocation2 + $0x8] sm:$0xff]  ;;  %v1095_v54 = vld [vmem:[#allocation4 + $0x108] ss:$12 sps:$4 sm:$0xff]   ;;  %vm863_vm0 = vcmask 7168  }
  0x2a   :  { %v38_v48 = vld [vmem:[#allocation2] sm:$0xff]  ;;  %v1091_v51 = vld [vmem:[#allocation4 + $0x10c] ss:$12 sps:$4 sm:$0xff]   ;;  %v874_v52 = vcombine.high %v39_v50, %v39_v50  ;;  %v1103_v60 = vld [vmem:[#allocation4 + $0xdc] ss:$12 sps:$4 sm:$0xff]   ;;  %v1225_v8 = vcombine.low %v39_v50, %v39_v50 }
  0x2b   :  { %703 = vmatpush1.bf16.msra.mxu0 %v1047_v18  ;;  %v1220_v49 = vcombine.high %v38_v48, %v38_v48  ;;  %v1093_v53 = vld [vmem:[#allocation4 + $0x28c] ss:$12 sps:$4 sm:$0xff]   ;;  %v1096_v55 = vld [vmem:[#allocation4 + $0x288] ss:$12 sps:$4 sm:$0xff]   ;;  %v1101_v58 = vld [vmem:[#allocation4 + $0xf0] ss:$12 sps:$4 sm:$0xff]   ;;  %v1223_v7 = vcombine.low %v38_v48, %v38_v48 }
  0x2c   :  { %744 = vmatpush1.bf16.msra.mxu1 %v1048_v19  ;;  %704 = vmatprep.subr.bf16.mxu0 %v1049_v20  ;;  %v1097_v56 = vld [vmem:[#allocation4 + $0xf4] ss:$12 sps:$4 sm:$0xff]   ;;  %v1102_v59 = vld [vmem:[#allocation4 + $0x270] ss:$12 sps:$4 sm:$0xff]   ;;  %v1107_v62 = vld [vmem:[#allocation4 + $0xd8] ss:$12 sps:$4 sm:$0xff]  }
  0x2d   :  { %745 = vmatprep.subr.bf16.mxu1 %v1051_v21  ;;  %726 = vmatprep.mubr.bf16.mxu0 %v1220_v49  ;;  %v1099_v57 = vld [vmem:[#allocation4 + $0x274] ss:$12 sps:$4 sm:$0xff]   ;;  %v1105_v61 = vld [vmem:[#allocation4 + $0x25c] ss:$12 sps:$4 sm:$0xff]   ;;  %v1108_v63 = vld [vmem:[#allocation4 + $0x258] ss:$12 sps:$4 sm:$0xff]  }
  0x2e   :  { %767 = vmatprep.mubr.bf16.mxu1 %v874_v52  ;;  %v1109_v0 = vld [vmem:[#allocation4 + $0xc4] ss:$12 sps:$4 sm:$0xff]   ;;  %v1113_v2 = vld [vmem:[#allocation4 + $0xc0] ss:$12 sps:$4 sm:$0xff]   ;;  %v1131_v18 = vld [vmem:[#allocation4 + $0x128] ss:$12 sps:$4 sm:$0xff]  }
  0x2f   :  { %705 = vmatpush1.bf16.msra.mxu0 %v1053_v22  ;;  %v1111_v1 = vld [vmem:[#allocation4 + $0x244] ss:$12 sps:$4 sm:$0xff]   ;;  %v1114_v3 = vld [vmem:[#allocation4 + $0x240] ss:$12 sps:$4 sm:$0xff]   ;;  %v1132_v19 = vld [vmem:[#allocation4 + $0x2a8] ss:$12 sps:$4 sm:$0xff]  }
  0x30   :  { %746 = vmatpush1.bf16.msra.mxu1 %v1054_v23  ;;  %706 = vmatprep.subr.bf16.mxu0 %v1055_v24  ;;  %v1119_v4 = vld [vmem:[#allocation4 + $0x170] ss:$12 sps:$4 sm:$0xff]   ;;  %v1123_v10 = vld [vmem:[#allocation4 + $0x158] ss:$12 sps:$4 sm:$0xff]   ;;  %v1127_v14 = vld [vmem:[#allocation4 + $0x140] ss:$12 sps:$4 sm:$0xff]  }
  0x31   :  { %747 = vmatprep.subr.bf16.mxu1 %v1057_v25  ;;  %v1120_v5 = vld [vmem:[#allocation4 + $0x2f0] ss:$12 sps:$4 sm:$0xff]   ;;  %v1124_v11 = vld [vmem:[#allocation4 + $0x2d8] ss:$12 sps:$4 sm:$0xff]   ;;  %v1128_v15 = vld [vmem:[#allocation4 + $0x2c0] ss:$12 sps:$4 sm:$0xff]  }
  0x32   :  { %v1121_v6 = vld [vmem:[#allocation4 + $0xb0] ss:$12 sps:$4 sm:$0xff]   ;;  %v1125_v12 = vld [vmem:[#allocation4 + $0x98] ss:$12 sps:$4 sm:$0xff]   ;;  %v1129_v16 = vld [vmem:[#allocation4 + $0x80] ss:$12 sps:$4 sm:$0xff]  }
  0x33   :  { %707 = vmatpush1.bf16.msra.mxu0 %v1059_v26  ;;  %v1122_v9 = vld [vmem:[#allocation4 + $0x230] ss:$12 sps:$4 sm:$0xff]   ;;  %v1126_v13 = vld [vmem:[#allocation4 + $0x218] ss:$12 sps:$4 sm:$0xff]   ;;  %v1130_v17 = vld [vmem:[#allocation4 + $0x200] ss:$12 sps:$4 sm:$0xff]  }
  0x34   :  { %748 = vmatpush1.bf16.msra.mxu1 %v1060_v27  ;;  %708 = vmatprep.subr.bf16.mxu0 %v1061_v28  ;;  %v1133_v20 = vld [vmem:[#allocation4 + $0x68] ss:$12 sps:$4 sm:$0xff]   ;;  %v1135_v22 = vld [vmem:[#allocation4 + $0x110] ss:$12 sps:$4 sm:$0xff]   ;;  %v1139_v26 = vld [vmem:[#allocation4 + $0xf8] ss:$12 sps:$4 sm:$0xff]  }
  0x35   :  { %749 = vmatprep.subr.bf16.mxu1 %v1063_v29  ;;  %v1134_v21 = vld [vmem:[#allocation4 + $0x1e8] ss:$12 sps:$4 sm:$0xff]   ;;  %v1136_v23 = vld [vmem:[#allocation4 + $0x290] ss:$12 sps:$4 sm:$0xff]   ;;  %v1140_v27 = vld [vmem:[#allocation4 + $0x278] ss:$12 sps:$4 sm:$0xff]  }
  0x36   :  { %v1137_v24 = vld [vmem:[#allocation4 + $0x50] ss:$12 sps:$4 sm:$0xff]   ;;  %v1141_v28 = vld [vmem:[#allocation4 + $0x38] ss:$12 sps:$4 sm:$0xff]  }
  0x37   :  { %709 = vmatpush1.bf16.msra.mxu0 %v1065_v30  ;;  %v1138_v25 = vld [vmem:[#allocation4 + $0x1d0] ss:$12 sps:$4 sm:$0xff]   ;;  %v1142_v29 = vld [vmem:[#allocation4 + $0x1b8] ss:$12 sps:$4 sm:$0xff]   ;;  %v1143_v30 = vld [vmem:[#allocation4 + $0xe0] ss:$12 sps:$4 sm:$0xff]  }
  0x38   :  { %750 = vmatpush1.bf16.msra.mxu1 %v1066_v31  ;;  %710 = vmatprep.subr.bf16.mxu0 %v1067_v32  ;;  %v1144_v31 = vld [vmem:[#allocation4 + $0x260] ss:$12 sps:$4 sm:$0xff]  }
  0x39   :  { %751 = vmatprep.subr.bf16.mxu1 %v1069_v33  ;;  %v1145_v32 = vld [vmem:[#allocation4 + $0x20] ss:$12 sps:$4 sm:$0xff]  }
  0x3a   :  { %v1146_v33 = vld [vmem:[#allocation4 + $0x1a0] ss:$12 sps:$4 sm:$0xff]  }
  0x3b   :  { %711 = vmatpush2.bf16.msra.mxu0 %v1071_v34  ;;  %v1147_v34 = vld [vmem:[#allocation4 + $0xc8] ss:$12 sps:$4 sm:$0xff]  }
  0x3c   :  { %752 = vmatpush2.bf16.msra.mxu1 %v1072_v35  ;;  %712 = vmatprep.subr.bf16.mxu0 %v1073_v36  ;;  %v1148_v35 = vld [vmem:[#allocation4 + $0x248] ss:$12 sps:$4 sm:$0xff]  }
  0x3d   :  { %753 = vmatprep.subr.bf16.mxu1 %v1075_v37  ;;  %v1149_v36 = vld [vmem:[#allocation4 + $0x8] ss:$12 sps:$4 sm:$0xff]  }
  0x3e   :  { %v1150_v37 = vld [vmem:[#allocation4 + $0x188] ss:$12 sps:$4 sm:$0xff]  }
  0x3f   :  { %713 = vmatpush2.bf16.msra.mxu0 %v1077_v38 }
  0x40   :  { %754 = vmatpush2.bf16.msra.mxu1 %v1078_v39  ;;  %714 = vmatprep.subr.bf16.mxu0 %v1079_v40 }
  0x41   :  { %755 = vmatprep.subr.bf16.mxu1 %v1081_v41 }
  0x43   :  { %715 = vmatpush2.bf16.msra.mxu0 %v1083_v42 }
  0x44   :  { %756 = vmatpush2.bf16.msra.mxu1 %v1084_v43  ;;  %716 = vmatprep.subr.bf16.mxu0 %v1085_v44 }
  0x45   :  { %757 = vmatprep.subr.bf16.mxu1 %v1087_v45 }
  0x47   :  { %717 = vmatpush2.bf16.msra.mxu0 %v1089_v46 }
  0x48   :  { %758 = vmatpush2.bf16.msra.mxu1 %v1090_v47  ;;  %718 = vmatprep.subr.bf16.mxu0 %v1091_v51 }
  0x49   :  { %759 = vmatprep.subr.bf16.mxu1 %v1093_v53 }
  0x4b   :  { %719 = vmatpush2.bf16.msra.mxu0 %v1095_v54 }
  0x4c   :  { %760 = vmatpush2.bf16.msra.mxu1 %v1096_v55  ;;  %720 = vmatprep.subr.bf16.mxu0 %v1097_v56 }
  0x4d   :  { %761 = vmatprep.subr.bf16.mxu1 %v1099_v57 }
  0x4f   :  { %721 = vmatpush2.bf16.msra.mxu0 %v1101_v58 }
  0x50   :  { %762 = vmatpush2.bf16.msra.mxu1 %v1102_v59  ;;  %722 = vmatprep.subr.bf16.mxu0 %v1103_v60 }
  0x51   :  { %763 = vmatprep.subr.bf16.mxu1 %v1105_v61 }
  0x53   :  { %723 = vmatpush2.bf16.msra.mxu0 %v1107_v62 }
  0x54   :  { %764 = vmatpush2.bf16.msra.mxu1 %v1108_v63  ;;  %724 = vmatprep.subr.bf16.mxu0 %v1109_v0 }
  0x55   :  { %765 = vmatprep.subr.bf16.mxu1 %v1111_v1 }
  0x57   :  { %725 = vmatpush2.bf16.msra.mxu0 %v1113_v2 }
  0x58   :  { %766 = vmatpush2.bf16.msra.mxu1 %v1114_v3  ;;  %971 = vmatprep.subr.bf16.mxu0 %v1119_v4 }
  0x59   :  { %993 = vmatprep.subr.bf16.mxu1 %v1120_v5 }
  0x5a   :  { %727 = vmatmul.mubr.bf16.vlgmr.msra.gmra.mxu0 %v1223_v7 }
  0x5b   :  { %768 = vmatmul.mubr.bf16.vlgmr.msra.gmra.mxu1 %v1225_v8  ;;  %972 = vmatpush3.bf16.msra.mxu0 %v1121_v6 }
  0x5c   :  { %994 = vmatpush3.bf16.msra.mxu1 %v1122_v9  ;;  %973 = vmatprep.subr.bf16.mxu0 %v1123_v10 }
  0x5d   :  { %995 = vmatprep.subr.bf16.mxu1 %v1124_v11  ;;  %808 = vmatprep.mubr.bf16.mxu0 %v1220_v49 }
  0x5e   :  { %848 = vmatprep.mubr.bf16.mxu1 %v874_v52 }
  0x5f   :  { %974 = vmatpush3.bf16.msra.mxu0 %v1125_v12 }
  0x60   :  { %996 = vmatpush3.bf16.msra.mxu1 %v1126_v13  ;;  %975 = vmatprep.subr.bf16.mxu0 %v1127_v14 }
  0x61   :  { %997 = vmatprep.subr.bf16.mxu1 %v1128_v15 }
  0x63   :  { %976 = vmatpush3.bf16.msra.mxu0 %v1129_v16 }
  0x64   :  { %998 = vmatpush3.bf16.msra.mxu1 %v1130_v17  ;;  %977 = vmatprep.subr.bf16.mxu0 %v1131_v18 }
  0x65   :  { %999 = vmatprep.subr.bf16.mxu1 %v1132_v19 }
  0x67   :  { %978 = vmatpush3.bf16.msra.mxu0 %v1133_v20 }
  0x68   :  { %1000 = vmatpush3.bf16.msra.mxu1 %v1134_v21  ;;  %979 = vmatprep.subr.bf16.mxu0 %v1135_v22 }
  0x69   :  { %1001 = vmatprep.subr.bf16.mxu1 %v1136_v23 }
  0x6b   :  { %980 = vmatpush3.bf16.msra.mxu0 %v1137_v24 }
  0x6c   :  { %1002 = vmatpush3.bf16.msra.mxu1 %v1138_v25  ;;  %981 = vmatprep.subr.bf16.mxu0 %v1139_v26 }
  0x6d   :  { %1003 = vmatprep.subr.bf16.mxu1 %v1140_v27 }
  0x6f   :  { %982 = vmatpush3.bf16.msra.mxu0 %v1141_v28 }
  0x70   :  { %1004 = vmatpush3.bf16.msra.mxu1 %v1142_v29  ;;  %983 = vmatprep.subr.bf16.mxu0 %v1143_v30 }
  0x71   :  { %1005 = vmatprep.subr.bf16.mxu1 %v1144_v31 }
  0x73   :  { %984 = vmatpush3.bf16.msra.mxu0 %v1145_v32 }
  0x74   :  { %1006 = vmatpush3.bf16.msra.mxu1 %v1146_v33  ;;  %985 = vmatprep.subr.bf16.mxu0 %v1147_v34 }
  0x75   :  { %1007 = vmatprep.subr.bf16.mxu1 %v1148_v35 }
  0x77   :  { %986 = vmatpush3.bf16.msra.mxu0 %v1149_v36 }
  0x78   :  { %1008 = vmatpush3.bf16.msra.mxu1 %v1150_v37 }
  0x7a   :  { %809 = vmatmul.mubr.bf16.vlgmr.msra.gmra.mxu0 %v1223_v7 }
  0x7b   :  { %849 = vmatmul.mubr.bf16.vlgmr.msra.gmra.mxu1 %v1225_v8 }
 0x11a   :  { %v728_v38 = vpop.f32.mrf.mxu0 }
 0x11b   :  { %v769_v39 = vpop.f32.mrf.mxu1 }
 0x11c   :  { %v730_v40 = vpop.f32.mrf.mxu0  ;;  %v770_v46 = vadd.f32 %v769_v39, %v728_v38 }
 0x11d   :  { %v771_v41 = vpop.f32.mrf.mxu1 }
 0x11e   :  { %v732_v42 = vpop.f32.mrf.mxu0  ;;  %v772_v47 = vadd.f32 %v771_v41, %v730_v40  ;;  %v856_v52 = vmul.f32 %v770_v46, %v770_v46 }
 0x11f   :  { %v773_v43 = vpop.f32.mrf.mxu1 }
 0x120   :  { %v733_v44 = vpop.f32.mrf.mxu0  ;;  %v857_v53 = vmul.f32 %v772_v47, %v772_v47 }
 0x121   :  { %v774_v45 = vpop.f32.mrf.mxu1 }
 0x122   :  { %v859_v62 = vadd.f32 %v857_v53, %v856_v52 }
 0x13a   :  { %v987_v48 = vpop.f32.mrf.mxu0 }
 0x13b   :  { %v1009_v49 = vpop.f32.mrf.mxu1 }
 0x13c   :  { %v988_v50 = vpop.f32.mrf.mxu0 }
 0x13d   :  { %v1010_v51 = vpop.f32.mrf.mxu1  ;;  %v989_v54 = vadd.f32 %v988_v50, %v987_v48 }
 0x13e   :  { %v1011_v55 = vadd.f32 %v1010_v51, %v1009_v49  ;;  %v990_v56 = vpop.f32.mrf.mxu0 }
 0x13f   :  { %v1012_v57 = vpop.f32.mrf.mxu1 }
 0x140   :  { %v851_v58 = vadd.f32 %v1011_v55, %v989_v54  ;;  %v991_v59 = vpop.f32.mrf.mxu0 }
 0x141   :  { %v1013_v60 = vpop.f32.mrf.mxu1 }
 0x142   :  { %v858_v61 = vmul.f32 %v851_v58, %v851_v58 }
 0x144   :  { %v860_v63 = vadd.f32 %v859_v62, %v858_v61 }
 0x146   :  { %861 = vadd.xlane.f32.xlu0 %v860_v63 }
 0x1cf   :  { %v862_v0 = vpop.xlane.xlu0 %861 }
 0x1d0   :  { %864 = vst.msk [vmem:[%s1237_s2] sm:$0xff] %vm863_vm0, %v862_v0 }
 0x1d1   :  { %869 = vsyncpa [#allocation3], 1 }
 0x1d2   :  { %870 = vsyncpa [#allocation5], 1 }

</bundles_post_ra>
